<compile_context>
chip_gen: v7x
topology: tpu7x:2x2x1
jax: 0.10.0
libtpu: 0.0.40
codegen_flags: <defaults>
</compile_context>

<pallas_src>
import functools

import jax
import jax.numpy as jnp
from jax.experimental import pallas as pl
from jax.experimental.pallas import tpu as pltpu


def channel_attention_kernel(src_ref, tgt_ref, p_ref, out_ref, *, cs, ct, hd, hw):
    # --- read the packed params once, slice the VALUE (static offsets) ---
    p = p_ref[...]
    w1t = p[0:cs, 0:hd]                                   # (Cs, Hd)  = w1.T
    w2t = p[cs:cs + hd, 0:ct]                             # (Hd, Ct)  = w2.T
    wc = p[cs + hd:cs + hd + ct, 0:cs]                    # (Ct, Cs)  1x1 conv weight
    b1 = p[cs + hd + ct:cs + hd + ct + 1, 0:hd]           # (1, Hd)
    b2 = p[cs + hd + ct + 1:cs + hd + ct + 2, 0:ct]       # (1, Ct)

    src = src_ref[...]                                    # (b_tile, Cs, HW)
    tgt = tgt_ref[...]                                    # (b_tile, Ct, HW)

    # 1) global average pool: one vectorized cross-lane reduce -> (b_tile, Cs)
    desc = jnp.sum(src, axis=-1) * jnp.float32(1.0 / hw)

    # 2) attention MLP, batched over the tile: Linear -> ReLU -> Linear -> Sigmoid
    h = jnp.maximum(jnp.dot(desc, w1t, preferred_element_type=jnp.float32) + b1, 0.0)
    attn = jax.nn.sigmoid(
        jnp.dot(h, w2t, preferred_element_type=jnp.float32) + b2)      # (b_tile, Ct)

    # 3+4) fold the per-(batch,channel) attention scale into the conv weight
    #      (tiny (b_tile,Ct,Cs) tensor), then one batched MXU matmul + residual
    #      add + a single contiguous lane-dense store.
    wc_b = attn[:, :, None] * wc[None, :, :]              # (b_tile, Ct, Cs)
    out_ref[...] = tgt + jnp.einsum(
        "boc,bcn->bon", wc_b, src, preferred_element_type=jnp.float32)


def channel_attention(source, target, w1, b1, w2, b2, wc, *,
                      b_tile=None, vmem_budget_bytes=8 * 1024 * 1024):
    """source: (B, Cs, H, W); target: (B, Ct, H, W). All float32.

    wc is the 1x1-conv weight (Ct, Cs); pass an identity matrix when the
    original module uses nn.Identity (source_channels == target_channels).
    """
    B, Cs, H, W = source.shape
    Bt, Ct, Ht, Wt = target.shape
    assert B == Bt
    # TODO(synk): adaptive_avg_pool2d fallback for mismatched spatial shapes.
    assert (H, W) == (Ht, Wt), "adaptive_avg_pool2d branch not implemented"
    Hd = w1.shape[0]
    HW = H * W

    # Free reshapes: natural NCHW layout, channels -> sublanes, H*W -> lanes.
    src3 = source.reshape(B, Cs, HW)
    tgt3 = target.reshape(B, Ct, HW)

    # Per-batch-element VMEM footprint: double-buffered src + tgt + out plus
    # the (Ct, HW) matmul-result intermediate.
    per_batch_bytes = (2 * (Cs + 2 * Ct) + Ct) * HW * 4

    if b_tile is None:
        # Largest divisor of B that (a) fits the VMEM budget and (b) leaves at
        # least min(4, B) grid steps so pipelining (and v7x megacore sharding)
        # actually happens.
        min_steps = min(4, B)
        b_tile = 1
        for d in range(1, B + 1):
            if B % d:
                continue
            if B // d < min_steps:
                continue
            if d * per_batch_bytes <= vmem_budget_bytes:
                b_tile = d
    assert B % b_tile == 0
    num_tiles = B // b_tile

    # ---- pack all parameters into one small array (one DMA, not five) ----
    # Layout is independent of the relative sizes of Cs/Ct/Hd.
    ncols = max(Cs, Ct, Hd)
    nrows = Cs + Hd + Ct + 2
    packed = jnp.zeros((nrows, ncols), jnp.float32)
    packed = packed.at[0:Cs, 0:Hd].set(w1.T)
    packed = packed.at[Cs:Cs + Hd, 0:Ct].set(w2.T)
    packed = packed.at[Cs + Hd:Cs + Hd + Ct, 0:Cs].set(wc)
    packed = packed.at[Cs + Hd + Ct, 0:Hd].set(b1)
    packed = packed.at[Cs + Hd + Ct + 1, 0:Ct].set(b2)

    kernel = functools.partial(channel_attention_kernel, cs=Cs, ct=Ct, hd=Hd, hw=HW)

    step_bytes = b_tile * per_batch_bytes + 2 * packed.size * 4
    vmem_limit = min(max(32 * 1024 * 1024, step_bytes + (4 << 20)), 64 * 1024 * 1024)

    cost = pl.CostEstimate(
        flops=2 * B * HW * Ct * Cs + 2 * B * (Cs * Hd + Hd * Ct),
        transcendentals=B * Ct,                                   # sigmoid
        bytes_accessed=(Cs + 2 * Ct) * B * HW * 4 + packed.size * 4,
    )

    out3 = pl.pallas_call(
        kernel,
        out_shape=jax.ShapeDtypeStruct((B, Ct, HW), jnp.float32),
        grid_spec=pltpu.PrefetchScalarGridSpec(
            num_scalar_prefetch=0,
            grid=(num_tiles,),
            in_specs=[
                pl.BlockSpec((b_tile, Cs, HW), lambda i: (i, 0, 0)),   # source
                pl.BlockSpec((b_tile, Ct, HW), lambda i: (i, 0, 0)),   # target
                pl.BlockSpec(packed.shape, lambda i: (0, 0)),          # params
            ],
            out_specs=pl.BlockSpec((b_tile, Ct, HW), lambda i: (i, 0, 0)),
        ),
        compiler_params=pltpu.CompilerParams(
            dimension_semantics=("parallel",),
            vmem_limit_bytes=vmem_limit,
        ),
        cost_estimate=cost,
    )(src3, tgt3, packed)

    return out3.reshape(B, Ct, H, W)


def reference(source, target, w1, b1, w2, b2, wc):
    desc = source.mean(axis=(2, 3))                               # (B, Cs)
    h = jnp.maximum(desc @ w1.T + b1, 0.0)
    attn = jax.nn.sigmoid(h @ w2.T + b2)                          # (B, Ct)
    adapted = jnp.einsum("oc,bchw->bohw", wc, source)             # 1x1 conv
    return target + adapted * attn[:, :, None, None]


if __name__ == "__main__":
    # Module config: source_channels=16, target_channels=8, reduction_ratio=4
    B, Cs, Ct, H, W = 2, 16, 8, 16, 16
    reduction_ratio = 4
    Hd = max(Cs // reduction_ratio, 1)

    key = jax.random.PRNGKey(0)
    ks = jax.random.split(key, 7)
    source = jax.random.normal(ks[0], (B, Cs, H, W), jnp.float32)
    target = jax.random.normal(ks[1], (B, Ct, H, W), jnp.float32)

    # Deterministic parameter init (PyTorch Linear/Conv weight layouts: (out, in)).
    w1 = jax.random.normal(ks[2], (Hd, Cs), jnp.float32) * 0.2
    b1 = jax.random.normal(ks[3], (Hd,), jnp.float32) * 0.1
    w2 = jax.random.normal(ks[4], (Ct, Hd), jnp.float32) * 0.2
    b2 = jax.random.normal(ks[5], (Ct,), jnp.float32) * 0.1
    # channel_adapter: Conv2d(Cs, Ct, 1, bias=False) -> weight (Ct, Cs)
    wc = jax.random.normal(ks[6], (Ct, Cs), jnp.float32) * 0.2

    out = channel_attention(source, target, w1, b1, w2, b2, wc)
    out = jax.block_until_ready(out)

    ref = reference(source, target, w1, b1, w2, b2, wc)
    assert out.shape == (B, Ct, H, W)
    assert jnp.allclose(out, ref, rtol=1e-4, atol=1e-4)

    print("KERNEL_OK")
</pallas_src>

<mosaic_0001>
module attributes {stable_mosaic.version = 11 : i64} {
  func.func @channel_attention_kernel(%arg0: i32, %arg1: memref<1x16x256xf32, #tpu.memory_space<vmem>>, %arg2: memref<1x8x256xf32, #tpu.memory_space<vmem>>, %arg3: memref<30x16xf32, #tpu.memory_space<vmem>>, %arg4: memref<1x8x256xf32, #tpu.memory_space<vmem>>) attributes {dimension_semantics = [#tpu.dimension_semantics<parallel>], iteration_bounds = array<i64: 2>, scalar_prefetch = 0 : i64, scratch_operands = 0 : i64, tpu.core_type = #tpu.core_type<tc>, window_params = [{transform_indices = @transform_0, window_bounds = array<i64: 1, 16, 256>}, {transform_indices = @transform_1, window_bounds = array<i64: 1, 8, 256>}, {pipeline_mode = #tpu.pipeline_mode<synchronous>, transform_indices = @transform_2, window_bounds = array<i64: 30, 16>}, {transform_indices = @transform_3, window_bounds = array<i64: 1, 8, 256>}]} {
    %c0 = arith.constant 0 : index
    %c0_0 = arith.constant 0 : index
    %0 = vector.load %arg3[%c0, %c0_0] : memref<30x16xf32, #tpu.memory_space<vmem>>, vector<30x16xf32>
    %1 = vector.extract_strided_slice %0 {offsets = [0, 0], sizes = [16, 4], strides = [1, 1]} : vector<30x16xf32> to vector<16x4xf32>
    %2 = vector.extract_strided_slice %0 {offsets = [16, 0], sizes = [4, 8], strides = [1, 1]} : vector<30x16xf32> to vector<4x8xf32>
    %3 = vector.extract_strided_slice %0 {offsets = [20, 0], sizes = [8, 16], strides = [1, 1]} : vector<30x16xf32> to vector<8x16xf32>
    %4 = vector.extract_strided_slice %0 {offsets = [28, 0], sizes = [1, 4], strides = [1, 1]} : vector<30x16xf32> to vector<1x4xf32>
    %5 = vector.extract_strided_slice %0 {offsets = [29, 0], sizes = [1, 8], strides = [1, 1]} : vector<30x16xf32> to vector<1x8xf32>
    %c0_1 = arith.constant 0 : index
    %c0_2 = arith.constant 0 : index
    %c0_3 = arith.constant 0 : index
    %6 = vector.load %arg1[%c0_1, %c0_2, %c0_3] : memref<1x16x256xf32, #tpu.memory_space<vmem>>, vector<1x16x256xf32>
    %c0_4 = arith.constant 0 : index
    %c0_5 = arith.constant 0 : index
    %c0_6 = arith.constant 0 : index
    %7 = vector.load %arg2[%c0_4, %c0_5, %c0_6] : memref<1x8x256xf32, #tpu.memory_space<vmem>>, vector<1x8x256xf32>
    %cst = arith.constant dense<0.000000e+00> : vector<1x16xf32>
    %8 = vector.multi_reduction <add>, %6, %cst [2] : vector<1x16x256xf32> to vector<1x16xf32>
    %cst_7 = arith.constant 3.906250e-03 : f32
    %9 = vector.broadcast %cst_7 : f32 to vector<1x16xf32>
    %10 = arith.mulf %8, %9 : vector<1x16xf32>
    %cst_8 = arith.constant dense<0.000000e+00> : vector<1x4xf32>
    %11 = tpu.matmul %10, %1, %cst_8 {dimension_numbers = #tpu.dot_dimension_numbers<[1], [0], [0], [1], [0, 0, 1, 1], [], []>} : vector<1x16xf32>, vector<16x4xf32>, vector<1x4xf32> -> vector<1x4xf32>
    %12 = arith.addf %11, %4 : vector<1x4xf32>
    %cst_9 = arith.constant 0.000000e+00 : f32
    %13 = vector.broadcast %cst_9 : f32 to vector<1x4xf32>
    %14 = arith.maximumf %12, %13 : vector<1x4xf32>
    %cst_10 = arith.constant dense<0.000000e+00> : vector<1x8xf32>
    %15 = tpu.matmul %14, %2, %cst_10 {dimension_numbers = #tpu.dot_dimension_numbers<[1], [0], [0], [1], [0, 0, 1, 1], [], []>} : vector<1x4xf32>, vector<4x8xf32>, vector<1x8xf32> -> vector<1x8xf32>
    %16 = arith.addf %15, %5 : vector<1x8xf32>
    %17 = arith.negf %16 : vector<1x8xf32>
    %18 = math.exp %17 : vector<1x8xf32>
    %cst_11 = arith.constant 1.000000e+00 : f32
    %19 = vector.broadcast %cst_11 : f32 to vector<1x8xf32>
    %20 = arith.addf %19, %18 : vector<1x8xf32>
    %21 = arith.divf %19, %20 : vector<1x8xf32>
    %22 = vector.shape_cast %21 : vector<1x8xf32> to vector<1x8x1xf32>
    %23 = vector.shape_cast %3 : vector<8x16xf32> to vector<1x8x16xf32>
    %24 = vector.broadcast %22 : vector<1x8x1xf32> to vector<1x8x16xf32>
    %25 = arith.mulf %24, %23 : vector<1x8x16xf32>
    "tpu.trace_start"() <{level = 10 : i32, message = "boc,bcn->bon"}> : () -> ()
    %cst_12 = arith.constant dense<0.000000e+00> : vector<1x8x256xf32>
    %26 = tpu.matmul %25, %6, %cst_12 {dimension_numbers = #tpu.dot_dimension_numbers<[2], [1], [1], [2], [0, 0, 0, 1, 1, 2], [0], [0]>} : vector<1x8x16xf32>, vector<1x16x256xf32>, vector<1x8x256xf32> -> vector<1x8x256xf32>
    "tpu.trace_stop"() : () -> ()
    %27 = arith.addf %7, %26 : vector<1x8x256xf32>
    %c0_13 = arith.constant 0 : index
    %c0_14 = arith.constant 0 : index
    %c0_15 = arith.constant 0 : index
    %28 = vector.load %arg4[%c0_13, %c0_14, %c0_15] : memref<1x8x256xf32, #tpu.memory_space<vmem>>, vector<1x8x256xf32>
    tpu.vector_store %arg4[%c0_13, %c0_14, %c0_15], %27 {strides = array<i32>} : memref<1x8x256xf32, #tpu.memory_space<vmem>>, vector<1x8x256xf32>,
    return
  }
  func.func @transform_0(%arg0: i32) -> (i32, i32, i32) {
    %c0_i32 = arith.constant 0 : i32
    %c0_i32_0 = arith.constant 0 : i32
    %c0_i32_1 = arith.constant 0 : i32
    return %arg0, %c0_i32, %c0_i32_0 : i32, i32, i32
  }
  func.func @transform_1(%arg0: i32) -> (i32, i32, i32) {
    %c0_i32 = arith.constant 0 : i32
    %c0_i32_0 = arith.constant 0 : i32
    %c0_i32_1 = arith.constant 0 : i32
    return %arg0, %c0_i32, %c0_i32_0 : i32, i32, i32
  }
  func.func @transform_2(%arg0: i32) -> (i32, i32) {
    %c0_i32 = arith.constant 0 : i32
    %c0_i32_0 = arith.constant 0 : i32
    %c0_i32_1 = arith.constant 0 : i32
    return %c0_i32, %c0_i32_0 : i32, i32
  }
  func.func @transform_3(%arg0: i32) -> (i32, i32, i32) {
    %c0_i32 = arith.constant 0 : i32
    %c0_i32_0 = arith.constant 0 : i32
    %c0_i32_1 = arith.constant 0 : i32
    return %arg0, %c0_i32, %c0_i32_0 : i32, i32, i32
  }
}

</mosaic_0001>

<bundles_post_ra>
// kernel: tpu_custom_call.1
= control target key start
LH: loop header
LB: loop body
LE: loop exit
PB: predicated region body
PF: predicated region fallthrough
CT: control target
= control target key end

     0   :  { %8 = vsyncpa [#allocation3], 0  ;;  %s1001_s0 = inlined_call_operand.hbm [shape: f32[2,16,256], index: 0, kind: input, shape index: {}]   ;;  %s1002_s1 = inlined_call_operand.vmem [shape: f32[2,8,256], index: 1, kind: input, shape index: {}]   ;;  %s1003_s2 = inlined_call_operand.vmem [shape: f32[30,16], index: 2, kind: input, shape index: {}]   ;;  %s1004_s3 = inlined_call_operand.hbm [shape: f32[2,8,256], index: 3, kind: output, shape index: {}]  }
   0x1   :  { %10 = vsyncpa [#allocation3 + $0x1], 0 }
   0x2   :  { %11 = vsyncpa [#allocation4], 0 }
   0x3   :  { %13 = vsyncpa [#allocation4 + $0x1], 0  ;;  %s819_s12 = smov 0   ;;  %s821_s13 = smov 0  }
   0x4   :  { %s823_s14 = smov 0   ;;  %s825_s15 = smov 0  }
   0x5 LB: > { %s840_s16 = sadd.s32 4294967295, %s790_s15   ;;  %s591_s17 = sadd.s32 4294967294, %s790_s15   ;;  %s790_s15 = sphi %s825_s15, %s1017_s15   ;;  %s786_s14 = sphi %s823_s14, %s1016_s14   ;;  %s782_s13 = sphi %s821_s13, %s1015_s13   ;;  %s778_s12 = sphi %s819_s12, %s1014_s12  }
   0x6   : > { %s844_s18 = sadd.s32 1, %s790_s15   ;;  %s26_s19 = sadd.s32 1, %s786_s14 }
   0x7   : > { %s23_s20 = ssub.s32 %s790_s15, %s844_s18  ;;  %p33_p0 = scmp.ne.s32.totalorder %s786_s14, %s782_s13 }
   0x8   : > { %p24_p1 = scmp.eq.s32.totalorder %s23_s20, 0  ;;  %p34_p2 = scmp.eq.s32.totalorder %s790_s15, 0 }
   0x9   : > { %p39_p3 = scmp.ne.s32.totalorder %s782_s13, %s778_s12  ;;  %p40_p4 = scmp.eq.s32.totalorder %s840_s16, 0 }
   0xa   : > { %s856_s21 = scalar_select %p24_p1, %s786_s14, %s26_s19  }
   0xb   : > { %p858_p5 = por %p34_p2, %p33_p0  ;;  %p862_p6 = por %p40_p4, %p39_p3 }
   0xc   : > { %p110_p7 = scmp.eq.s32.totalorder %s840_s16, 1  ;;  %p116_p8 = scmp.eq.s32.totalorder %s591_s17, 1 }
   0xd   : > { %p651_p10 = scmp.lt.s32.totalorder %s790_s15, 2  ;;  %s139_s26 = sand.u32 1, %s786_s14  }
   0xe   : > { %p869_p11 = por %p110_p7, %p33_p0  ;;  %p873_p12 = por %p116_p8, %p39_p3 }
   0xf   : > { %s612_s27 = sshll.u32 %s790_s15, 9  ;;  %s594_s28 = sshll.u32 %s139_s26, 5 }
  0x10   : > { %s1008_s24 = scalar_select %p869_p11, 1, 0 }
  0x11   : > { %s1009_s25 = scalar_select %p873_p12, 1, 0 }
  0x12   : > { %s882_s4 = scalar_lea.hbm %s1001_s0, %s612_s27  ;;  %s143_s5 = scalar_lea.vmem [#allocation2], %s594_s28 }
  0x13   : > { %s150_s6 = sshll.u32 %s143_s5, 4  ;;  %p886_p13 = pnand %p651_p10, %p858_p5  ;;  %s890_s6 = int_to_ptr.vmem [resolvable:$true] %s150_s6 }
  0x14   : > { %s892_s8 = scalar_lea.sflag [#allocation3], %s139_s26  ;;  %s694_s9 = scalar_lea.hbm %s882_s4, 512 }
  0x15   : > { %p695_p0 = scmp.ne.s32.totalorder %s882_s4, %s694_s9  ;;  %p696_p1 = pneg %p886_p13 }
  0x16   : > { %s699_s17 = scalar_lea.hbm %s1001_s0, 1024  ;;  %p700_p4 = scmp.lt.u32.totalorder %s882_s4, %s1001_s0 }
  0x17   : > { %p697_p2 = pnand %p696_p1, %p695_p0  ;;  %p701_p5 = scmp.lt.u32.totalorder %s699_s17, %s694_s9 }
  0x18   : > { %p703_p8 = scmp.lt.u32.totalorder %s694_s9, %s882_s4 }
  0x19   : > { %p698_p3 = pneg %p697_p2  ;;  %p702_p7 = por %p701_p5, %p700_p4 }
  0x1b   : > { %p704_p10 = por %p703_p8, %p702_p7 }
  0x1d   : > { %p705_p9 = pnand %p704_p10, %p698_p3 }
  0x1f   : > { %708 = shalt.err (!%p705_p9)
}
  0x20   : > { %s709_s22 = scalar_lea.vmem %s890_s6, 512  ;;  %s792_s26 = smov [#allocation2]  }
  0x21   : > { %p710_p0 = scmp.ne.s32.totalorder %s890_s6, %s709_s22  ;;  %s714_s27 = sshll.u32 %s792_s26, 4  ;;  %s715_s27 = int_to_ptr.vmem [resolvable:$false] %s714_s27 }
  0x22   : > { %s716_s28 = scalar_lea.vmem %s715_s27, 1024  ;;  %p717_p11 = scmp.lt.s32.totalorder %s890_s6, %s715_s27 }
  0x23   : > { %p712_p2 = pnand %p710_p0, %p696_p1  ;;  %p718_p4 = scmp.lt.s32.totalorder %s716_s28, %s709_s22 }
  0x25   : > { %p713_p12 = pneg %p712_p2  ;;  %p719_p5 = por %p718_p4, %p717_p11 }
  0x27   : > { %p720_p7 = pnand %p719_p5, %p713_p12 }
  0x29   : > { %723 = shalt.err (!%p720_p7)
}
  0x2a   : > { %s793_s29 = smov 256   ;;  %s794_s30 = smov 16  }
  0x2b   : > { %646 = dma.hbm_to_vmem [thread:$0]  (!%p886_p13), %s882_s4, 512, %s890_s6, %s892_s8, %s793_s29, %s793_s29, %s794_s30  }
  0x2c   : > { %p597_p9 = scmp.ge.s32.totalorder %s790_s15, 1  ;;  %p166_p1 = scmp.lt.s32.totalorder %s790_s15, 3 }
  0x2e   : > { %p167_p3 = pnand %p597_p9, %p166_p1 }
  0x2f   : > { %s923_s5 = sand.u32 (!%p167_p3), 1, %s782_s13  }
  0x30   : > { %170 = sbr.rel (%p167_p3) target bundleno = 1014 (0x3f6), region = 32  ;;  %s598_s9 = sshll.u32 (!%p167_p3), %s923_s5, 5 }
  0x31   : > { %s173_s10 = scalar_lea.sflag (!%p167_p3), [#allocation3], %s923_s5  ;;  %s176_s11 = scalar_lea.vmem (!%p167_p3), [#allocation2], %s598_s9 }
  0x37   : > { %769 = dma.done.wait (%p862_p6), %s173_s10, 512  }
  0x38   : > { %771 = vsyncadd (%p862_p6), %s173_s10, 4294966784  ;;  %v213_v0 = vld [vmem:[%s176_s11] sm:$0xff]  ;;  %v214_v1 = vld [vmem:[%s176_s11 + $0x8] sm:$0xff]  ;;  %v795_v11 = vmov 0.0|0.0   ;;  %vm796_vm0 = vmmov 0   ;;  %v797_v12 = vmov 0.0   ;;  %v229_v13 = vlaneseq }
  0x39   : > { %v215_v2 = vld [vmem:[%s176_s11 + $0x10] sm:$0xff]  ;;  %v216_v3 = vld [vmem:[%s176_s11 + $0x18] sm:$0xff]  ;;  %v219_v4 = vadd.f32 %v214_v1, %v213_v0  ;;  %v209_v8 = vld [vmem:[%s1003_s2] sm:$0xff]  ;;  %632 = vmatprep.subr.bf16.mxu0 %v795_v11  ;;  %624 = vmatprep.mubr.msk.f32.mxu0 %vm796_vm0, %v797_v12  ;;  %vm240_vm1 = vcmask 130112   ;;  %vm245_vm2 = vcmask 130048   ;;  %vm325_vm3 = vcmask 1043456  }
  0x3a   : > { %v637_v5 = vpack.c.bf16 %v215_v2, %v213_v0  ;;  %v635_v6 = vpack.c.bf16 %v216_v3, %v214_v1  ;;  %v222_v7 = vadd.f32 %v216_v3, %v215_v2  ;;  %v210_v9 = vld [vmem:[%s1003_s2 + $0x8] sm:$0xff]  ;;  %627 = vmatprep.subr.mxu1 %v797_v12  ;;  %629 = vmatprep.mubr.msk.f32.mxu1 %vm796_vm0, %v797_v12  ;;  %v230_v14 = vand.u32 127, %v229_v13  ;;  %v211_v26 = vld [vmem:[%s1003_s2 + $0x10] sm:$0xff]  ;;  %v212_v27 = vld [vmem:[%s1003_s2 + $0x18] sm:$0x3f]  ;;  %p204_p6 = scmp.lt.s32.totalorder %s840_s16, 1 }
  0x3b   : > { %220 = vadd.xlane.f32.xlu0 %v219_v4  ;;  %v633_v10 = vpack.c.bf16 %v210_v9, %v209_v8  ;;  %v232_v15 = vshrl.u32 %v229_v13, 7  ;;  %628 = vmatpush3.msk.msra.mxu1 %vm325_vm3, %v211_v26  ;;  %v243_v28 = vrot.slane %v212_v27, 4  ;;  %vm321_vm4 = vcmask 31744   ;;  %s599_s27 = sshll.u32 %s923_s5, 4  ;;  %s614_s9 = sshll.u32 %s840_s16, 8 }
  0x3c   : > { %v235_v16 = vadd.s32 4294967288, %v230_v14  ;;  %636 = vmatprep.subr.bf16.mxu1 %v635_v6  ;;  %v319_v33 = vrot.slane %v212_v27, 5  ;;  %v412_v43 = vrot.slane %v211_v26, 4  ;;  %s205_s22 = scalar_select %p204_p6, %s840_s16, 1 }
  0x3d   : > { %634 = vmatpush3.bf16.msra.mxu0 %v633_v10  ;;  %v233_v18 = vsub.s32 %v230_v14, %v232_v15  ;;  %v407_v40 = vsub.s32 0, %v232_v15  ;;  %s203_s10 = scalar_lea.vmem [#allocation5], %s599_s27  ;;  %s957_s7 = scalar_lea.hbm %s1004_s3, %s614_s9 }
  0x3e   : > { %v238_v20 = vsub.s32 %v235_v16, %v232_v15  ;;  %v413_v44 = vsel %vm325_vm3, %v412_v43, %v243_v28  ;;  %s613_s26 = sshll.u32 %s205_s22, 4  ;;  %s509_s11 = sshll.u32 %s203_s10, 4  ;;  %s959_s11 = int_to_ptr.vmem [resolvable:$true] %s509_s11 }
  0x3f   : > { %223 = vadd.xlane.f32.xlu0 %v222_v7  ;;  %s208_s30 = scalar_lea.vmem %s1002_s1, %s613_s26  ;;  %s495_s8 = scalar_lea.sflag [#allocation4], %s923_s5 }
  0x40   : > { %v217_v47 = vld [vmem:[%s208_s30] sm:$0xff]  ;;  %v218_v48 = vld [vmem:[%s208_s30 + $0x8] sm:$0xff]  ;;  %s724_s16 = scalar_lea.vmem %s959_s11, 256  ;;  %p1011_p12 = scmp.ne.s32.totalorder %s1008_s24, 0 }
  0x41   : > { %p725_p11 = scmp.ne.s32.totalorder %s959_s11, %s724_s16  ;;  %s798_s23 = smov [#allocation5]  }
  0x42   : > { %s728_s17 = sshll.u32 %s798_s23, 4  ;;  %s729_s17 = int_to_ptr.vmem [resolvable:$false] %s728_s17 }
  0x43   : > { %p726_p13 = pnand %p725_p11, %p1011_p12  ;;  %s730_s19 = scalar_lea.vmem %s729_s17, 512 }
  0x44   : > { %p731_p10 = scmp.lt.s32.totalorder %s959_s11, %s729_s17  ;;  %p732_p0 = scmp.lt.s32.totalorder %s730_s19, %s724_s16 }
  0x45   : > { %p727_p8 = pneg %p726_p13 }
  0x46   : > { %p733_p2 = por %p732_p0, %p731_p10 }
  0x48   : > { %p734_p4 = pnand %p733_p2, %p727_p8 }
  0xc8   : > { %v221_v17 = vpop.xlane.xlu0 %220 }
  0xc9   : > { %v225_v19 = vmul.f32 0.00390625, %v221_v17 }
  0xcb   : > { %v234_v23 = vrot.slane %v225_v19, %v233_v18 }
  0xcc   : > { %v224_v21 = vpop.xlane.xlu0 %223 }
  0xcd   : > { %v226_v22 = vmul.f32 0.00390625, %v224_v21 }
  0xcf   : > { %v239_v24 = vrot.slane %v226_v22, %v238_v20 }
  0xd1   : > { %v241_v25 = vsel %vm240_vm1, %v239_v24, %v234_v23 }
  0xd2   : > { %625 = vmatmul.mubr.msk.f32.vlgmr.msra.gmra.mrb[0].mxu0 %vm245_vm2, %v241_v25 }
 0x1a5   : > { %v314_v29 = vpop.f32.mrb[0].mxu0 }
 0x1a6   : > { %v315_v30 = vadd.f32 %v314_v29, %v243_v28  ;;  %v626_v31 = vpop.f32.mrb[1].mxu0 }
 0x1a8   : > { %v318_v32 = vmax.f32 %v315_v30, 0.0 }
 0x1aa   : > { %630 = vmatmul.mubr.msk.f32.vlgmr.msra.gmra.mrb[0].mxu1 %vm321_vm4, %v318_v32 }
 0x1ab   : > { %638 = vmatpush1.bf16.msra.mxu1 %v637_v5  ;;  %483 = vmatprep.mubr.f32.mxu1 %v797_v12 }
 0x27d   : > { %v395_v34 = vpop.f32.mrb[0].mxu1 }
 0x27e   : > { %v396_v35 = vadd.f32 %v395_v34, %v319_v33  ;;  %v631_v36 = vpop.f32.mrb[1].mxu1 }
 0x280   : > { %v605_v37 = vmul.f32 -1.442695, %v396_v35 }
 0x282   : > { %690 = vpow2.f32 %v605_v37 }
 0x28c   : > { %v691_v38 = vpop.eup %690 }
 0x28d   : > { %v402_v39 = vadd.f32 1.0, %v691_v38 }
 0x28f   : > { %692 = vrcp.f32 %v402_v39 }
 0x299   : > { %v693_v41 = vpop.eup %692 }
 0x29a   : > { %v408_v42 = vrot.slane %v693_v41, %v407_v40 }
 0x29c   : > { %410 = vbcast.lane.b32.xlu1 %v408_v42, 256 }
 0x30e   : > { %v411_v45 = vpop.permute.xlu1 %410 }
 0x30f   : > { %v415_v46 = vmul.f32 %v413_v44, %v411_v45 }
 0x311   : > { %606 = vmatmul.mubr.msk.f32.vlgmr.msra.gmra.mrb[2].mxu1 %vm245_vm2, %v415_v46 }
 0x3e4   : > { %v485_v49 = vpop.f32.mrb[2].mxu1 }
 0x3e5   : > { %v490_v50 = vadd.f32 %v485_v49, %v217_v47  ;;  %v487_v51 = vpop.f32.mrb[3].mxu1 }
 0x3e6   : > { %v491_v52 = vadd.f32 %v487_v51, %v218_v48 }
 0x3e7   : > { %492 = vst [vmem:[%s203_s10] sm:$0xff] %v490_v50 }
 0x3e8   : > { %493 = vst [vmem:[%s203_s10 + $0x8] sm:$0xff] %v491_v52 }
 0x3e9   : > { %737 = shalt.err (!%p734_p4)
}
 0x3ea   : > { %s738_s5 = scalar_lea.hbm %s957_s7, 256  ;;  %s742_s26 = scalar_lea.hbm %s1004_s3, 512 }
 0x3eb   : > { %p739_p5 = scmp.ne.s32.totalorder %s957_s7, %s738_s5  ;;  %p743_p1 = scmp.lt.u32.totalorder %s957_s7, %s1004_s3 }
 0x3ec   : > { %p744_p3 = scmp.lt.u32.totalorder %s742_s26, %s738_s5  ;;  %p746_p11 = scmp.lt.u32.totalorder %s738_s5, %s957_s7 }
 0x3ed   : > { %p740_p7 = pnand %p739_p5, %p1011_p12 }
 0x3ee   : > { %p745_p6 = por %p744_p3, %p743_p1 }
 0x3ef   : > { %p741_p9 = pneg %p740_p7 }
 0x3f0   : > { %p747_p13 = por %p746_p11, %p745_p6 }
 0x3f2   : > { %p748_p8 = pnand %p747_p13, %p741_p9 }
 0x3f4   : > { %751 = shalt.err (!%p748_p8)
}
 0x3f5   : > { %641 = dma.vmem_to_hbm [thread:$0]  (%p1011_p12), %s959_s11, 256, %s957_s7, %s495_s8  }
 0x3f6 PF: > { %s521_s29 = sand.u32 1, %s778_s12   ;;  %p1012_p10 = scmp.ne.s32.totalorder %s1009_s25, 0 }
 0x3f7   : > { %p1013_p0 = scmp.ge.s32.totalorder %s790_s15, 2  ;;  %s522_s30 = scalar_lea.sflag [#allocation4], %s521_s29 }
 0x3f9   : > { %p648_p2 = pnand %p1013_p0, %p1012_p10 }
 0x3fb   : > { %773 = dma.done.wait (!%p648_p2), %s522_s30, 256  }
 0x3fc   : > { %775 = vsyncadd (!%p648_p2), %s522_s30, 4294967040  ;;  %p16_p4 = scmp.ge.s32.totalorder %s844_s18, 4   ;;  %s1014_s12 = smov %s782_s13 }
 0x3fd   : > { %s1015_s13 = smov %s786_s14  ;;  %s1016_s14 = smov %s856_s21 }
 0x3fe   : > { %s1017_s15 = smov %s844_s18  ;;  %18 = sbr.rel (!%p16_p4) target bundleno = 5 (0x5), region = 80 }
 0x405   :  { %527 = vsyncpa [#allocation3], 1 }
 0x406   :  { %529 = vsyncpa [#allocation3 + $0x1], 1 }
 0x407   :  { %530 = vsyncpa [#allocation4], 1 }
 0x408   :  { %532 = vsyncpa [#allocation4 + $0x1], 1 }

</bundles_post_ra>
